<compile_context>
chip_gen: v5e
topology: v5e:2x2
jax: 0.10.0
libtpu: 0.0.40
codegen_flags: <defaults>
</compile_context>

<pallas_src>
import math

import jax
import jax.numpy as jnp
from jax.experimental import pallas as pl
from jax.experimental.pallas import tpu as pltpu

EPS = 1e-8
_VMEM_BLOCK_BUDGET = 40 * 1024 * 1024   # cap on 2 in + 2 out double-buffered blocks (v7x-safe)
_VMEM_LIMIT_BYTES = 64 * 1024 * 1024    # raise scoped VMEM above 16/32 MiB defaults


def _norm_kernel(x_ref, o_ref):
    # x_ref / o_ref view: (TM, L) — TM independent rows, each normalized over its L elements.
    x = x_ref[...].astype(jnp.float32)
    L = x.shape[-1]
    inv_n = 1.0 / L
    # torch.std(unbiased=True) divides by (N - 1); with a single element it is NaN — match that.
    inv_nm1 = 1.0 / (L - 1) if L > 1 else float("nan")

    mn = jnp.sum(x, axis=-1, keepdims=True) * inv_n
    centered = x - mn
    var = jnp.sum(centered * centered, axis=-1, keepdims=True) * inv_nm1
    # Exact reciprocal on the (TM, 1) column, then a broadcast multiply: avoids a
    # full-width vector divide while keeping 1e-5 accuracy.
    inv_ss = 1.0 / (jnp.sqrt(var) + EPS)
    o_ref[...] = centered * inv_ss


def _pick_tm(rows, cols, in_itemsize):
    """Rows per grid step: as many as the VMEM budget allows (multiple of 8 or == rows)."""
    # footprint ≈ 2 double-buffered input blocks (input dtype) + 2 output blocks (f32)
    bytes_per_row = cols * (2 * in_itemsize + 2 * 4)
    max_tm = max(1, _VMEM_BLOCK_BUDGET // max(1, bytes_per_row))

    if max_tm >= rows:
        # Whole problem fits in one block. When there are enough rows, split into >= 2
        # parallel grid steps so v7x's two TensorCores both get work (cheap on 1-TC chips).
        if rows >= 16:
            half = (rows + 1) // 2
            tm = -(-half // 8) * 8
            return min(tm, rows)
        return rows

    tm = (max_tm // 8) * 8
    if tm < 8:
        # TODO(synk): rows wider than the VMEM budget (huge H*W planes) would need a
        # chunked sum / sum-of-squares reduction pass; not needed for these shapes.
        tm = 8
    return tm


def norm_layer(ten):
    """Pallas implementation of NormLayer.forward (output dtype float32)."""
    ten = jnp.asarray(ten)  # keep native dtype; cast to f32 happens inside the kernel
    if ten.ndim < 2:
        raise ValueError(f"unsupported input rank {ten.ndim}")

    orig_shape = ten.shape
    if ten.ndim == 4:
        # per-sample tensor is 3-D -> per-channel normalization
        N, C, H, W = ten.shape
        rows, cols = N * C, H * W
    else:
        # per-sample tensor is not 3-D -> whole-sample normalization
        rows = ten.shape[0]
        cols = int(math.prod(ten.shape[1:]))

    x = ten.reshape(rows, cols)
    tm = _pick_tm(rows, cols, x.dtype.itemsize)
    grid = (pl.cdiv(rows, tm),)

    out = pl.pallas_call(
        _norm_kernel,
        out_shape=jax.ShapeDtypeStruct((rows, cols), jnp.float32),
        grid_spec=pltpu.PrefetchScalarGridSpec(
            num_scalar_prefetch=0,
            grid=grid,
            in_specs=[pl.BlockSpec((tm, cols), lambda i: (i, 0))],
            out_specs=pl.BlockSpec((tm, cols), lambda i: (i, 0)),
        ),
        compiler_params=pltpu.CompilerParams(
            dimension_semantics=("parallel",),
            vmem_limit_bytes=_VMEM_LIMIT_BYTES,
        ),
    )(x)

    return out.reshape(orig_shape)


def _ref_norm_layer(ten):
    """Pure-JAX reference mirroring the PyTorch module (4-D NCHW path)."""
    ten = jnp.asarray(ten, dtype=jnp.float32)
    mn = jnp.mean(ten, axis=(-2, -1), keepdims=True)
    n_elem = ten.shape[-2] * ten.shape[-1]
    var = jnp.sum((ten - mn) ** 2, axis=(-2, -1), keepdims=True) / (n_elem - 1)
    ss = jnp.sqrt(var) + EPS
    return (ten - mn) / ss


if __name__ == "__main__":
    key = jax.random.PRNGKey(0)
    # NCHW: batch=2, channels=4, spatial=16x16
    x = jax.random.normal(key, (2, 4, 16, 16), dtype=jnp.float32) * 3.0 + 1.5

    out = jax.block_until_ready(norm_layer(x))

    ref = _ref_norm_layer(x)
    assert out.shape == x.shape and out.dtype == jnp.float32
    assert jnp.allclose(out, ref, atol=1e-5, rtol=1e-5), "mismatch vs reference"

    print("KERNEL_OK")
</pallas_src>

<mosaic_0001>
module attributes {stable_mosaic.version = 11 : i64} {
  func.func @_norm_kernel(%arg0: i32, %arg1: memref<8x256xf32, #tpu.memory_space<vmem>>, %arg2: memref<8x256xf32, #tpu.memory_space<vmem>>) attributes {dimension_semantics = [#tpu.dimension_semantics<parallel>], iteration_bounds = array<i64: 1>, scalar_prefetch = 0 : i64, scratch_operands = 0 : i64, tpu.core_type = #tpu.core_type<tc>, window_params = [{transform_indices = @transform_0, window_bounds = array<i64: 8, 256>}, {transform_indices = @transform_1, window_bounds = array<i64: 8, 256>}]} {
    %c0 = arith.constant 0 : index
    %c0_0 = arith.constant 0 : index
    %0 = vector.load %arg1[%c0, %c0_0] : memref<8x256xf32, #tpu.memory_space<vmem>>, vector<8x256xf32>
    %cst = arith.constant dense<0.000000e+00> : vector<8xf32>
    %1 = vector.multi_reduction <add>, %0, %cst [1] : vector<8x256xf32> to vector<8xf32>
    %2 = vector.shape_cast %1 : vector<8xf32> to vector<8x1xf32>
    %cst_1 = arith.constant 3.906250e-03 : f32
    %3 = vector.broadcast %cst_1 : f32 to vector<8x1xf32>
    %4 = arith.mulf %2, %3 : vector<8x1xf32>
    %5 = vector.broadcast %4 : vector<8x1xf32> to vector<8x256xf32>
    %6 = arith.subf %0, %5 : vector<8x256xf32>
    %7 = arith.mulf %6, %6 : vector<8x256xf32>
    %cst_2 = arith.constant dense<0.000000e+00> : vector<8xf32>
    %8 = vector.multi_reduction <add>, %7, %cst_2 [1] : vector<8x256xf32> to vector<8xf32>
    %9 = vector.shape_cast %8 : vector<8xf32> to vector<8x1xf32>
    %cst_3 = arith.constant 0.00392156886 : f32
    %10 = vector.broadcast %cst_3 : f32 to vector<8x1xf32>
    %11 = arith.mulf %9, %10 : vector<8x1xf32>
    %12 = math.sqrt %11 : vector<8x1xf32>
    %cst_4 = arith.constant 9.99999993E-9 : f32
    %13 = vector.broadcast %cst_4 : f32 to vector<8x1xf32>
    %14 = arith.addf %12, %13 : vector<8x1xf32>
    %cst_5 = arith.constant 1.000000e+00 : f32
    %15 = vector.broadcast %cst_5 : f32 to vector<8x1xf32>
    %16 = arith.divf %15, %14 : vector<8x1xf32>
    %17 = vector.broadcast %16 : vector<8x1xf32> to vector<8x256xf32>
    %18 = arith.mulf %6, %17 : vector<8x256xf32>
    %c0_6 = arith.constant 0 : index
    %c0_7 = arith.constant 0 : index
    %19 = vector.load %arg2[%c0_6, %c0_7] : memref<8x256xf32, #tpu.memory_space<vmem>>, vector<8x256xf32>
    tpu.vector_store %arg2[%c0_6, %c0_7], %18 {strides = array<i32>} : memref<8x256xf32, #tpu.memory_space<vmem>>, vector<8x256xf32>,
    return
  }
  func.func @transform_0(%arg0: i32) -> (i32, i32) {
    %c0_i32 = arith.constant 0 : i32
    %c0_i32_0 = arith.constant 0 : i32
    return %arg0, %c0_i32 : i32, i32
  }
  func.func @transform_1(%arg0: i32) -> (i32, i32) {
    %c0_i32 = arith.constant 0 : i32
    %c0_i32_0 = arith.constant 0 : i32
    return %arg0, %c0_i32 : i32, i32
  }
}

</mosaic_0001>

<bundles_post_ra>
// kernel: tpu_custom_call.1
= control target key start
LH: loop header
LB: loop body
LE: loop exit
PB: predicated region body
PF: predicated region fallthrough
CT: control target
= control target key end

     0   :  { %6 = vsyncpa [#allocation3], 0  ;;  %s162_s0 = inlined_call_operand.hbm [shape: f32[8,256], index: 0, kind: input, shape index: {}]   ;;  %s163_s1 = inlined_call_operand.hbm [shape: f32[8,256], index: 1, kind: output, shape index: {}]  }
   0x1   :  { %7 = vsyncpa [#allocation4], 0  ;;  %s13_s8 = sshll.u32 %s162_s0, 4  ;;  %s144_s9 = smov [#allocation2]   ;;  %s14_s8 = int_to_ptr.hbm [resolvable:$true] %s13_s8 }
   0x2   :  { %s15_s10 = sshll.u32 %s144_s9, 4  ;;  %s16_s10 = int_to_ptr.vmem [resolvable:$true] %s15_s10 }
   0x3   :  { %18 = dma.hbm_to_vmem [thread:$0]  %s14_s8, 256, %s16_s10, [#allocation3]  }
   0x4   :  { %140 = dma.done.wait [#allocation3], 256  }
   0x5   :  { %141 = vsyncadd [#allocation3], 4294967040  ;;  %v23_v0 = vld [vmem:[#allocation2] sm:$0xff]  ;;  %v24_v1 = vld [vmem:[#allocation2 + $0x8] sm:$0xff]  ;;  %s145_s0 = smov [#allocation5]   ;;  %s76_s14 = sshll.u32 %s163_s1, 4  ;;  %s77_s14 = int_to_ptr.hbm [resolvable:$true] %s76_s14 }
   0x6   :  { %v25_v2 = vadd.f32 %v24_v1, %v23_v0  ;;  %s74_s11 = sshll.u32 %s145_s0, 4  ;;  %s75_s11 = int_to_ptr.vmem [resolvable:$true] %s74_s11 }
   0x8   :  { %26 = vadd.xlane.f32.xlu0 %v25_v2 }
  0x7b   :  { %v27_v3 = vpop.xlane.xlu0 %26 }
  0x7c   :  { %v28_v4 = vmul.f32 0.00390625, %v27_v3 }
  0x7e   :  { %v29_v5 = vsub.f32 %v23_v0, %v28_v4  ;;  %v30_v6 = vsub.f32 %v24_v1, %v28_v4 }
  0x80   :  { %v31_v7 = vmul.f32 %v29_v5, %v29_v5  ;;  %v32_v8 = vmul.f32 %v30_v6, %v30_v6 }
  0x82   :  { %v33_v9 = vadd.f32 %v32_v8, %v31_v7 }
  0x84   :  { %34 = vadd.xlane.f32.xlu0 %v33_v9 }
  0xf7   :  { %v35_v10 = vpop.xlane.xlu0 %34 }
  0xf8   :  { %v36_v11 = vmul.f32 0.003921569, %v35_v10 }
  0xfa   :  { %88 = vrsqrt.f32 %v36_v11  ;;  %vm44_vm0 = vcmp.eq.f32.partialorder %v36_v11, inf  ;;  %v47_v19 = vand.u32 2147483648, %v36_v11  ;;  %vm46_vm1 = vcmp.eq.f32.partialorder %v36_v11, 0.0 }
 0x100   :  { %v89_v12 = vpop.eup %88 }
 0x101   :  { %v38_v13 = vmul.f32 %v89_v12, %v36_v11 }
 0x103   :  { %v39_v14 = vmul.f32 %v89_v12, %v38_v13 }
 0x105   :  { %v40_v15 = vmul.f32 0.5, %v39_v14 }
 0x107   :  { %v41_v16 = vsub.f32 1.5, %v40_v15 }
 0x109   :  { %v42_v17 = vmul.f32 %v89_v12, %v41_v16 }
 0x10b   :  { %v43_v18 = vmul.f32 %v42_v17, %v36_v11 }
 0x10d   :  { %v45_v20 = vsel %vm44_vm0, %v36_v11, %v43_v18 }
 0x10e   :  { %v48_v21 = vsel %vm46_vm1, %v47_v19, %v45_v20 }
 0x10f   :  { %v49_v22 = vadd.f32 1e-08, %v48_v21 }
 0x111   :  { %90 = vrcp.f32 %v49_v22  ;;  %v61_v26 = vand.u32 2147483648, %v49_v22  ;;  %v59_v28 = vand.u32 2147483647, %v49_v22  ;;  %vm55_vm3 = vweird.f32 %v49_v22 }
 0x113   :  { %v62_v30 = vor.u32 1.1754944e-38, %v61_v26  ;;  %vm60_vm5 = vcmp.eq.f32.partialorder %v59_v28, 8.507059e+37 }
 0x117   :  { %v91_v23 = vpop.eup %90 }
 0x118   :  { %v51_v24 = vmul.f32 %v91_v23, %v49_v22  ;;  %vm56_vm2 = vweird.f32 %v91_v23 }
 0x119   :  { %vm57_vm4 = vmor %vm55_vm3, %vm56_vm2 }
 0x11a   :  { %v52_v25 = vsub.f32 1.0, %v51_v24 }
 0x11c   :  { %v53_v27 = vmul.f32 %v91_v23, %v52_v25 }
 0x11e   :  { %v54_v29 = vadd.f32 %v91_v23, %v53_v27 }
 0x120   :  { %v58_v31 = vsel %vm57_vm4, %v91_v23, %v54_v29 }
 0x121   :  { %v63_v32 = vsel %vm60_vm5, %v62_v30, %v58_v31 }
 0x122   :  { %v65_v33 = vmul.f32 %v63_v32, %v29_v5  ;;  %v66_v34 = vmul.f32 %v63_v32, %v30_v6 }
 0x124   :  { %67 = vst [vmem:[#allocation5] sm:$0xff] %v65_v33 }
 0x125   :  { %68 = vst [vmem:[#allocation5 + $0x8] sm:$0xff] %v66_v34 }
 0x126   :  { %79 = dma.vmem_to_hbm [thread:$0]  %s75_s11, 256, %s77_s14, [#allocation4]  }
 0x127   :  { %142 = dma.done.wait [#allocation4], 256  }
 0x128   :  { %143 = vsyncadd [#allocation4], 4294967040 }
 0x129   :  { %84 = vsyncpa [#allocation3], 1 }
 0x12a   :  { %85 = vsyncpa [#allocation4], 1 }

</bundles_post_ra>
